<compile_context>
chip_gen: v7x
topology: tpu7x:2x2x1
jax: 0.10.0
libtpu: 0.0.40
codegen_flags: <defaults>
</compile_context>

<pallas_src>
import jax
import jax.numpy as jnp
from jax.experimental import pallas as pl
from jax.experimental.pallas import tpu as pltpu


def _round_up(n, m):
    return ((n + m - 1) // m) * m


def actor_kernel(maxa_ref, x_ref, w1_ref, b1_ref, w2_ref, b2_ref,
                 w3_ref, b3_ref, o_ref):
    x = x_ref[...]                                              # [TB, S]
    # layer 1: Linear(state_dim -> net_width) + ReLU   (MXU, f32 accumulate)
    h1 = jnp.dot(x, w1_ref[...], preferred_element_type=jnp.float32)
    h1 = jnp.maximum(h1 + b1_ref[...], 0.0)                     # [TB, H1_p]
    # layer 2: Linear(net_width -> 300) + ReLU
    h2 = jnp.dot(h1.astype(w2_ref.dtype), w2_ref[...],
                 preferred_element_type=jnp.float32)
    h2 = jnp.maximum(h2 + b2_ref[...], 0.0)                     # [TB, H2_p]
    # layer 3: Linear(300 -> action_dim) + tanh * maxaction  (tanh -> EUP slot)
    h3 = jnp.dot(h2.astype(w3_ref.dtype), w3_ref[...],
                 preferred_element_type=jnp.float32)
    maxa = maxa_ref[0, 0]                                       # SMEM scalar
    o_ref[...] = (jnp.tanh(h3 + b3_ref[...]) * maxa).astype(o_ref.dtype)


def prepare_actor_params(params, *, compute_dtype=jnp.float32):
    """One-time packing of Actor params for the Pallas kernel (cache the result).

    `params` holds weights already transposed to [in, out] and biases [out].
    Only output-feature columns are zero-padded to multiples of 128 (exact
    through matmul/ReLU/tanh); biases stay f32; weights take `compute_dtype`
    (use jnp.bfloat16 on v6e/v7x to halve memory traffic)."""
    w1, b1 = params["w1"], params["b1"]
    w2, b2 = params["w2"], params["b2"]
    w3, b3 = params["w3"], params["b3"]
    S, H1 = w1.shape
    H1b, H2 = w2.shape
    H2b, A = w3.shape
    assert H1 == H1b and H2 == H2b
    H1p, H2p, Ap = _round_up(H1, 128), _round_up(H2, 128), _round_up(A, 128)

    f32, cd = jnp.float32, compute_dtype
    prepped = {
        "w1": jnp.pad(w1.astype(cd), ((0, 0), (0, H1p - H1))),
        "b1": jnp.pad(b1.astype(f32).reshape(1, -1), ((0, 0), (0, H1p - H1))),
        "w2": jnp.pad(w2.astype(cd), ((0, H1p - H1), (0, H2p - H2))),
        "b2": jnp.pad(b2.astype(f32).reshape(1, -1), ((0, 0), (0, H2p - H2))),
        "w3": jnp.pad(w3.astype(cd), ((0, H2p - H2), (0, Ap - A))),
        "b3": jnp.pad(b3.astype(f32).reshape(1, -1), ((0, 0), (0, Ap - A))),
    }
    dims = {"state_dim": S, "action_dim": A, "H1p": H1p, "H2p": H2p, "Ap": Ap,
            "compute_dtype": cd}
    return prepped, dims


def _choose_batch_tile(B, batch_tile):
    if B <= 8:
        return B                       # single full-array block (legal: == B)
    # Multiple of 8 sublanes; aim for >= 2 grid steps so v7x's two TensorCores
    # can split the "parallel" batch axis; cap for VMEM budget.
    return max(8, min(batch_tile, _round_up(pl.cdiv(B, 2), 8)))


def actor_forward(state, prepped, dims, maxaction, *, batch_tile=2048):
    """state: [B, state_dim].  prepped/dims: from prepare_actor_params.
    Returns [B, action_dim] float32."""
    B, S = state.shape
    assert S == dims["state_dim"], "state_dim mismatch with prepared params"
    A, H1p, H2p, Ap = dims["action_dim"], dims["H1p"], dims["H2p"], dims["Ap"]
    cd = dims["compute_dtype"]

    TB = _choose_batch_tile(B, batch_tile)
    grid = (pl.cdiv(B, TB),)           # ragged last tile is masked by Pallas

    x = state.astype(cd)               # no-op for f32 inputs + f32 compute
    maxa = jnp.asarray(maxaction, jnp.float32).reshape(1, 1)

    def resident(shape):
        # weights/biases: constant block index -> fetched once, stay in VMEM
        return pl.BlockSpec(shape, lambda i: (0, 0))

    out = pl.pallas_call(
        actor_kernel,
        out_shape=jax.ShapeDtypeStruct((B, Ap), jnp.float32),
        grid=grid,
        in_specs=[
            pl.BlockSpec((1, 1), lambda i: (0, 0),
                         memory_space=pltpu.MemorySpace.SMEM),   # maxaction
            pl.BlockSpec((TB, S), lambda i: (i, 0)),             # state tile
            resident((S, H1p)), resident((1, H1p)),              # layer 1
            resident((H1p, H2p)), resident((1, H2p)),            # layer 2
            resident((H2p, Ap)), resident((1, Ap)),              # layer 3
        ],
        out_specs=pl.BlockSpec((TB, Ap), lambda i: (i, 0)),
        compiler_params=pltpu.CompilerParams(
            dimension_semantics=("parallel",),
            vmem_limit_bytes=48 * 1024 * 1024),
    )(maxa, x, prepped["w1"], prepped["b1"], prepped["w2"], prepped["b2"],
      prepped["w3"], prepped["b3"])

    return out[:, :A]                  # cheap lane slice only (no batch slice)


def init_actor_params(key, state_dim, net_width, action_dim):
    """Deterministic synthetic init (PyTorch-Linear-style uniform fan-in bounds).
    Weights stored pre-transposed as [in, out] so the kernel computes x @ W + b."""
    ks = jax.random.split(key, 6)

    def uniform(k, shape, fan_in):
        bound = 1.0 / jnp.sqrt(fan_in)
        return jax.random.uniform(k, shape, jnp.float32, -bound, bound)

    return {
        "w1": uniform(ks[0], (state_dim, net_width), state_dim),
        "b1": uniform(ks[1], (net_width,), state_dim),
        "w2": uniform(ks[2], (net_width, 300), net_width),
        "b2": uniform(ks[3], (300,), net_width),
        "w3": uniform(ks[4], (300, action_dim), 300),
        "b3": uniform(ks[5], (action_dim,), 300),
    }


def actor_ref(state, params, maxaction):
    """Pure-JAX reference for correctness checking."""
    a = jnp.maximum(state @ params["w1"] + params["b1"], 0.0)
    a = jnp.maximum(a @ params["w2"] + params["b2"], 0.0)
    return jnp.tanh(a @ params["w3"] + params["b3"]) * maxaction


if __name__ == "__main__":
    # Small shapes consistent with Actor(state_dim, action_dim, net_width, maxaction)
    batch, state_dim, net_width, action_dim = 2, 16, 32, 4
    maxaction = 2.0

    key = jax.random.PRNGKey(0)
    pkey, xkey, xkey2, xkey3 = jax.random.split(key, 4)
    params = init_actor_params(pkey, state_dim, net_width, action_dim)

    # One-time param prep (padded + cast), reused across every forward call.
    prepped, dims = prepare_actor_params(params)

    # tiny-batch case (B=2): single full-array block
    state = jax.random.normal(xkey, (batch, state_dim), jnp.float32)
    out = jax.block_until_ready(actor_forward(state, prepped, dims, maxaction))
    ref = actor_ref(state, params, maxaction)
    assert out.shape == (batch, action_dim)
    assert jnp.allclose(out, ref, atol=1e-5, rtol=1e-5), "mismatch (B=2)"

    # larger batch: 2 grid steps (pipelined tiles, v7x 2-TC friendly)
    big_batch = 512
    state_big = jax.random.normal(xkey2, (big_batch, state_dim), jnp.float32)
    out_big = jax.block_until_ready(
        actor_forward(state_big, prepped, dims, maxaction, batch_tile=256))
    ref_big = actor_ref(state_big, params, maxaction)
    assert out_big.shape == (big_batch, action_dim)
    assert jnp.allclose(out_big, ref_big, atol=1e-5, rtol=1e-5), "mismatch (B=512)"

    # ragged batch (B not a multiple of the tile): masked last-tile store
    ragged_batch = 300
    state_rg = jax.random.normal(xkey3, (ragged_batch, state_dim), jnp.float32)
    out_rg = jax.block_until_ready(
        actor_forward(state_rg, prepped, dims, maxaction, batch_tile=128))
    ref_rg = actor_ref(state_rg, params, maxaction)
    assert out_rg.shape == (ragged_batch, action_dim)
    assert jnp.allclose(out_rg, ref_rg, atol=1e-5, rtol=1e-5), "mismatch (B=300)"

    # optional bf16 compute path (halves HBM/VMEM traffic on v6e/v7x)
    prepped_bf16, dims_bf16 = prepare_actor_params(params,
                                                   compute_dtype=jnp.bfloat16)
    out_bf16 = jax.block_until_ready(
        actor_forward(state_big, prepped_bf16, dims_bf16, maxaction,
                      batch_tile=256))
    assert out_bf16.shape == (big_batch, action_dim)
    assert jnp.allclose(out_bf16, ref_big, atol=1e-1, rtol=1e-1), \
        "mismatch (bf16 path)"

    print("KERNEL_OK")
</pallas_src>

<mosaic_0001>
module attributes {stable_mosaic.version = 11 : i64} {
  func.func @actor_kernel(%arg0: i32, %arg1: memref<1x1xf32, #tpu.memory_space<smem>>, %arg2: memref<2x16xf32, #tpu.memory_space<vmem>>, %arg3: memref<16x128xf32, #tpu.memory_space<vmem>>, %arg4: memref<1x128xf32, #tpu.memory_space<vmem>>, %arg5: memref<128x384xf32, #tpu.memory_space<vmem>>, %arg6: memref<1x384xf32, #tpu.memory_space<vmem>>, %arg7: memref<384x128xf32, #tpu.memory_space<vmem>>, %arg8: memref<1x128xf32, #tpu.memory_space<vmem>>, %arg9: memref<2x128xf32, #tpu.memory_space<vmem>>) attributes {dimension_semantics = [#tpu.dimension_semantics<parallel>], iteration_bounds = array<i64: 1>, scalar_prefetch = 0 : i64, scratch_operands = 0 : i64, tpu.core_type = #tpu.core_type<tc>, window_params = [{transform_indices = @transform_0, window_bounds = array<i64: 1, 1>}, {transform_indices = @transform_1, window_bounds = array<i64: 2, 16>}, {pipeline_mode = #tpu.pipeline_mode<synchronous>, transform_indices = @transform_2, window_bounds = array<i64: 16, 128>}, {pipeline_mode = #tpu.pipeline_mode<synchronous>, transform_indices = @transform_3, window_bounds = array<i64: 1, 128>}, {pipeline_mode = #tpu.pipeline_mode<synchronous>, transform_indices = @transform_4, window_bounds = array<i64: 128, 384>}, {pipeline_mode = #tpu.pipeline_mode<synchronous>, transform_indices = @transform_5, window_bounds = array<i64: 1, 384>}, {pipeline_mode = #tpu.pipeline_mode<synchronous>, transform_indices = @transform_6, window_bounds = array<i64: 384, 128>}, {pipeline_mode = #tpu.pipeline_mode<synchronous>, transform_indices = @transform_7, window_bounds = array<i64: 1, 128>}, {transform_indices = @transform_8, window_bounds = array<i64: 2, 128>}]} {
    %c0 = arith.constant 0 : index
    %c0_0 = arith.constant 0 : index
    %0 = vector.load %arg2[%c0, %c0_0] : memref<2x16xf32, #tpu.memory_space<vmem>>, vector<2x16xf32>
    %c0_1 = arith.constant 0 : index
    %c0_2 = arith.constant 0 : index
    %1 = vector.load %arg3[%c0_1, %c0_2] : memref<16x128xf32, #tpu.memory_space<vmem>>, vector<16x128xf32>
    %cst = arith.constant dense<0.000000e+00> : vector<2x128xf32>
    %2 = tpu.matmul %0, %1, %cst {dimension_numbers = #tpu.dot_dimension_numbers<[1], [0], [0], [1], [0, 0, 1, 1], [], []>} : vector<2x16xf32>, vector<16x128xf32>, vector<2x128xf32> -> vector<2x128xf32>
    %c0_3 = arith.constant 0 : index
    %c0_4 = arith.constant 0 : index
    %3 = vector.load %arg4[%c0_3, %c0_4] : memref<1x128xf32, #tpu.memory_space<vmem>>, vector<1x128xf32>
    %4 = vector.broadcast %3 : vector<1x128xf32> to vector<2x128xf32>
    %5 = arith.addf %2, %4 : vector<2x128xf32>
    %cst_5 = arith.constant 0.000000e+00 : f32
    %6 = vector.broadcast %cst_5 : f32 to vector<2x128xf32>
    %7 = arith.maximumf %5, %6 : vector<2x128xf32>
    %c0_6 = arith.constant 0 : index
    %c0_7 = arith.constant 0 : index
    %8 = vector.load %arg5[%c0_6, %c0_7] : memref<128x384xf32, #tpu.memory_space<vmem>>, vector<128x384xf32>
    %cst_8 = arith.constant dense<0.000000e+00> : vector<2x384xf32>
    %9 = tpu.matmul %7, %8, %cst_8 {dimension_numbers = #tpu.dot_dimension_numbers<[1], [0], [0], [1], [0, 0, 1, 1], [], []>} : vector<2x128xf32>, vector<128x384xf32>, vector<2x384xf32> -> vector<2x384xf32>
    %c0_9 = arith.constant 0 : index
    %c0_10 = arith.constant 0 : index
    %10 = vector.load %arg6[%c0_9, %c0_10] : memref<1x384xf32, #tpu.memory_space<vmem>>, vector<1x384xf32>
    %11 = vector.broadcast %10 : vector<1x384xf32> to vector<2x384xf32>
    %12 = arith.addf %9, %11 : vector<2x384xf32>
    %cst_11 = arith.constant 0.000000e+00 : f32
    %13 = vector.broadcast %cst_11 : f32 to vector<2x384xf32>
    %14 = arith.maximumf %12, %13 : vector<2x384xf32>
    %c0_12 = arith.constant 0 : index
    %c0_13 = arith.constant 0 : index
    %15 = vector.load %arg7[%c0_12, %c0_13] : memref<384x128xf32, #tpu.memory_space<vmem>>, vector<384x128xf32>
    %cst_14 = arith.constant dense<0.000000e+00> : vector<2x128xf32>
    %16 = tpu.matmul %14, %15, %cst_14 {dimension_numbers = #tpu.dot_dimension_numbers<[1], [0], [0], [1], [0, 0, 1, 1], [], []>} : vector<2x384xf32>, vector<384x128xf32>, vector<2x128xf32> -> vector<2x128xf32>
    %c0_15 = arith.constant 0 : index
    %c0_16 = arith.constant 0 : index
    %17 = memref.load %arg1[%c0_15, %c0_16] : memref<1x1xf32, #tpu.memory_space<smem>>
    %c0_17 = arith.constant 0 : index
    %c0_18 = arith.constant 0 : index
    %18 = vector.load %arg8[%c0_17, %c0_18] : memref<1x128xf32, #tpu.memory_space<vmem>>, vector<1x128xf32>
    %19 = vector.broadcast %18 : vector<1x128xf32> to vector<2x128xf32>
    %20 = arith.addf %16, %19 : vector<2x128xf32>
    %21 = math.tanh %20 : vector<2x128xf32>
    %22 = vector.broadcast %17 : f32 to vector<2x128xf32>
    %23 = arith.mulf %21, %22 : vector<2x128xf32>
    %c0_19 = arith.constant 0 : index
    %c0_20 = arith.constant 0 : index
    %24 = vector.load %arg9[%c0_19, %c0_20] : memref<2x128xf32, #tpu.memory_space<vmem>>, vector<2x128xf32>
    tpu.vector_store %arg9[%c0_19, %c0_20], %23 {strides = array<i32>} : memref<2x128xf32, #tpu.memory_space<vmem>>, vector<2x128xf32>,
    return
  }
  func.func @transform_0(%arg0: i32) -> (i32, i32) {
    %c0_i32 = arith.constant 0 : i32
    %c0_i32_0 = arith.constant 0 : i32
    %c0_i32_1 = arith.constant 0 : i32
    return %c0_i32, %c0_i32_0 : i32, i32
  }
  func.func @transform_1(%arg0: i32) -> (i32, i32) {
    %c0_i32 = arith.constant 0 : i32
    %c0_i32_0 = arith.constant 0 : i32
    return %arg0, %c0_i32 : i32, i32
  }
  func.func @transform_2(%arg0: i32) -> (i32, i32) {
    %c0_i32 = arith.constant 0 : i32
    %c0_i32_0 = arith.constant 0 : i32
    %c0_i32_1 = arith.constant 0 : i32
    return %c0_i32, %c0_i32_0 : i32, i32
  }
  func.func @transform_3(%arg0: i32) -> (i32, i32) {
    %c0_i32 = arith.constant 0 : i32
    %c0_i32_0 = arith.constant 0 : i32
    %c0_i32_1 = arith.constant 0 : i32
    return %c0_i32, %c0_i32_0 : i32, i32
  }
  func.func @transform_4(%arg0: i32) -> (i32, i32) {
    %c0_i32 = arith.constant 0 : i32
    %c0_i32_0 = arith.constant 0 : i32
    %c0_i32_1 = arith.constant 0 : i32
    return %c0_i32, %c0_i32_0 : i32, i32
  }
  func.func @transform_5(%arg0: i32) -> (i32, i32) {
    %c0_i32 = arith.constant 0 : i32
    %c0_i32_0 = arith.constant 0 : i32
    %c0_i32_1 = arith.constant 0 : i32
    return %c0_i32, %c0_i32_0 : i32, i32
  }
  func.func @transform_6(%arg0: i32) -> (i32, i32) {
    %c0_i32 = arith.constant 0 : i32
    %c0_i32_0 = arith.constant 0 : i32
    %c0_i32_1 = arith.constant 0 : i32
    return %c0_i32, %c0_i32_0 : i32, i32
  }
  func.func @transform_7(%arg0: i32) -> (i32, i32) {
    %c0_i32 = arith.constant 0 : i32
    %c0_i32_0 = arith.constant 0 : i32
    %c0_i32_1 = arith.constant 0 : i32
    return %c0_i32, %c0_i32_0 : i32, i32
  }
  func.func @transform_8(%arg0: i32) -> (i32, i32) {
    %c0_i32 = arith.constant 0 : i32
    %c0_i32_0 = arith.constant 0 : i32
    return %arg0, %c0_i32 : i32, i32
  }
}

</mosaic_0001>

<bundles_post_ra>
// kernel: tpu_custom_call.1
= control target key start
LH: loop header
LB: loop body
LE: loop exit
PB: predicated region body
PF: predicated region fallthrough
CT: control target
= control target key end

     0   :  { %14 = vsyncpa [#allocation4], 0  ;;  %s1100_s0 = inlined_call_operand.<no memory space> [shape: f32[1,1], index: 0, kind: input, shape index: {}]   ;;  %s1101_s1 = inlined_call_operand.vmem [shape: f32[2,16], index: 1, kind: input, shape index: {}]   ;;  %s1102_s2 = inlined_call_operand.hbm [shape: f32[16,128], index: 2, kind: input, shape index: {}]   ;;  %s1103_s3 = inlined_call_operand.vmem [shape: f32[1,128], index: 3, kind: input, shape index: {}]   ;;  %s1104_s4 = inlined_call_operand.hbm [shape: f32[128,384], index: 4, kind: input, shape index: {}]   ;;  %s1105_s5 = inlined_call_operand.vmem [shape: f32[1,384], index: 5, kind: input, shape index: {}]   ;;  %s1106_s6 = inlined_call_operand.hbm [shape: f32[384,128], index: 6, kind: input, shape index: {}]   ;;  %s1107_s7 = inlined_call_operand.vmem [shape: f32[1,128], index: 7, kind: input, shape index: {}]   ;;  %s1108_s8 = inlined_call_operand.hbm [shape: f32[2,128], index: 8, kind: output, shape index: {}]  }
   0x1   :  { %15 = vsyncpa [#allocation7], 0 }
   0x2   :  { %16 = vsyncpa [#allocation5], 0  ;;  %s956_s27 = smov [#allocation6]   ;;  %s862_s9 = scalar_lea.hbm %s1104_s4, 6144 }
   0x3   :  { %s40_s28 = sshll.u32 %s956_s27, 4  ;;  %p863_p0 = scmp.ne.s32.totalorder %s1104_s4, %s862_s9  ;;  %s41_s28 = int_to_ptr.vmem [resolvable:$true] %s40_s28 }
   0x4   :  { %p866_p1 = scmp.lt.u32.totalorder %s862_s9, %s1104_s4 }
   0x6   :  { %p868_p2 = pnand %p866_p1, %p863_p0 }
   0x8   :  { %871 = shalt.err (!%p868_p2)
}
   0x9   :  { %s872_s14 = scalar_lea.vmem %s41_s28, 6144  ;;  %p877_p4 = scmp.lt.s32.totalorder %s41_s28, %s41_s28 }
   0xa   :  { %p873_p3 = scmp.ne.s32.totalorder %s41_s28, %s872_s14  ;;  %p878_p5 = scmp.lt.s32.totalorder %s872_s14, %s872_s14 }
   0xc   :  { %p879_p6 = por %p878_p5, %p877_p4 }
   0xe   :  { %p880_p7 = pnand %p879_p6, %p873_p3 }
  0x10   :  { %883 = shalt.err (!%p880_p7)
}
  0x11   :  { %s957_s15 = smov 384   ;;  %s958_s16 = smov 24  }
  0x12   :  { %46 = dma.hbm_to_vmem [thread:$0]  %s1104_s4, 6144, %s41_s28, [#allocation7], %s957_s15, %s957_s15, %s958_s16  }
  0x13   :  { %s959_s19 = smov [#allocation3]   ;;  %s884_s23 = scalar_lea.hbm %s1102_s2, 256 }
  0x14   :  { %s26_s20 = sshll.u32 %s959_s19, 4  ;;  %p885_p8 = scmp.ne.s32.totalorder %s1102_s2, %s884_s23  ;;  %s27_s20 = int_to_ptr.vmem [resolvable:$true] %s26_s20 }
  0x15   :  { %p888_p9 = scmp.lt.u32.totalorder %s884_s23, %s1102_s2 }
  0x17   :  { %p890_p10 = pnand %p888_p9, %p885_p8 }
  0x19   :  { %893 = shalt.err (!%p890_p10)
}
  0x1a   :  { %s894_s29 = scalar_lea.vmem %s27_s20, 256  ;;  %p899_p12 = scmp.lt.s32.totalorder %s27_s20, %s27_s20 }
  0x1b   :  { %p895_p11 = scmp.ne.s32.totalorder %s27_s20, %s894_s29  ;;  %p900_p13 = scmp.lt.s32.totalorder %s894_s29, %s894_s29 }
  0x1d   :  { %p901_p0 = por %p900_p13, %p899_p12 }
  0x1f   :  { %p902_p1 = pnand %p901_p0, %p895_p11 }
  0x21   :  { %905 = shalt.err (!%p902_p1)
}
  0x22   :  { %s960_s4 = smov 128   ;;  %s961_s28 = smov 8  }
  0x23   :  { %32 = dma.hbm_to_vmem [thread:$0]  %s1102_s2, 256, %s27_s20, [#allocation4], %s960_s4, %s960_s4, %s961_s28  }
  0x24   :  { %s962_s10 = smov [#allocation8]   ;;  %s906_s14 = scalar_lea.hbm %s1106_s6, 6144 }
  0x25   :  { %s54_s11 = sshll.u32 %s962_s10, 4  ;;  %p907_p2 = scmp.ne.s32.totalorder %s1106_s6, %s906_s14  ;;  %s55_s11 = int_to_ptr.vmem [resolvable:$true] %s54_s11 }
  0x26   :  { %p910_p3 = scmp.lt.u32.totalorder %s906_s14, %s1106_s6 }
  0x28   :  { %p912_p4 = pnand %p910_p3, %p907_p2 }
  0x2a   :  { %915 = shalt.err (!%p912_p4)
}
  0x2b   :  { %s916_s19 = scalar_lea.vmem %s55_s11, 6144  ;;  %p921_p6 = scmp.lt.s32.totalorder %s55_s11, %s55_s11 }
  0x2c   :  { %p917_p5 = scmp.ne.s32.totalorder %s55_s11, %s916_s19  ;;  %p922_p7 = scmp.lt.s32.totalorder %s916_s19, %s916_s19 }
  0x2e   :  { %p923_p8 = por %p922_p7, %p921_p6 }
  0x30   :  { %p924_p9 = pnand %p923_p8, %p917_p5 }
  0x32   :  { %927 = shalt.err (!%p924_p9)
}
  0x33   :  { %60 = dma.hbm_to_vmem [thread:$0]  %s1106_s6, 6144, %s55_s11, [#allocation7], %s960_s4, %s960_s4, %s961_s28  }
  0x34   :  { %950 = dma.done.wait [#allocation4], 256  }
  0x35   :  { %951 = vsyncadd [#allocation4], 4294967040 }
  0x36   :  { %952 = dma.done.wait [#allocation7], 12288  }
  0x37   :  { %953 = vsyncadd [#allocation7], 4294955008  ;;  %v963_v0 = vmov 0.0|0.0   ;;  %vm964_vm0 = vmmov 0   ;;  %v965_v1 = vmov 0.0   ;;  %v73_v2 = vld [vmem:[#allocation3] sm:$0xff] }
  0x38   :  { %734 = vmatprep.subr.bf16.mxu0 %v963_v0  ;;  %661 = vmatprep.mubr.msk.f32.mxu0 %vm964_vm0, %v965_v1  ;;  %v74_v3 = vld [vmem:[#allocation3 + $0x8] sm:$0xff]  ;;  %v72_v5 = vld [vmem:[%s1101_s1] sm:$0x3]  ;;  %v158_v6 = vld [vmem:[#allocation6 + $0x8] sm:$0xff]  ;;  %vm82_vm1 = vcmask 130048   ;;  %s966_s27 = smov [#allocation9]  }
  0x39   :  { %286 = vmatprep.mubr.f32.mxu1 %v965_v1  ;;  %v735_v4 = vpack.c.bf16 %v74_v3, %v73_v2  ;;  %v161_v7 = vld [vmem:[#allocation6 + $0x20] sm:$0xff]  ;;  %v160_v10 = vld [vmem:[#allocation6 + $0x18] sm:$0xff]  ;;  %v159_v11 = vld [vmem:[#allocation6 + $0x10] sm:$0xff]  ;;  %s572_s29 = sshll.u32 %s966_s27, 4  ;;  %s573_s29 = int_to_ptr.vmem [resolvable:$true] %s572_s29 }
  0x3a   :  { %v157_v8 = vld [vmem:[#allocation6] sm:$0xff]  ;;  %v737_v9 = vpack.c.bf16 %v161_v7, %v158_v6  ;;  %v162_v12 = vld [vmem:[#allocation6 + $0x28] sm:$0xff]  ;;  %v164_v15 = vld [vmem:[#allocation6 + $0x38] sm:$0xff]  ;;  %s928_s4 = scalar_lea.vmem %s573_s29, 32  ;;  %p933_p11 = scmp.lt.s32.totalorder %s573_s29, %s573_s29 }
  0x3b   :  { %736 = vmatpush3.bf16.msra.mxu0 %v735_v4  ;;  %v739_v13 = vpack.c.bf16 %v160_v10, %v157_v8  ;;  %v770_v14 = vpack.c.bf16 %v162_v12, %v159_v11  ;;  %v167_v16 = vld [vmem:[#allocation6 + $0x50] sm:$0xff]  ;;  %v166_v19 = vld [vmem:[#allocation6 + $0x48] sm:$0xff]  ;;  %v165_v20 = vld [vmem:[#allocation6 + $0x40] sm:$0xff]  ;;  %p929_p10 = scmp.ne.s32.totalorder %s573_s29, %s928_s4  ;;  %p934_p12 = scmp.lt.s32.totalorder %s928_s4, %s928_s4 }
  0x3c   :  { %v163_v17 = vld [vmem:[#allocation6 + $0x30] sm:$0xff]  ;;  %738 = vmatprep.subr.bf16.mxu1 %v737_v9  ;;  %769 = vmatprep.subr.bf16.mxu0 %v963_v0  ;;  %v741_v18 = vpack.c.bf16 %v167_v16, %v164_v15  ;;  %v168_v21 = vld [vmem:[#allocation6 + $0x58] sm:$0xff]  ;;  %v170_v23 = vld [vmem:[#allocation6 + $0x68] sm:$0xff] }
  0x3d   :  { %740 = vmatpush1.bf16.msra.mxu1 %v739_v13  ;;  %v743_v22 = vpack.c.bf16 %v166_v19, %v163_v17  ;;  %v173_v24 = vld [vmem:[#allocation6 + $0x80] sm:$0xff]  ;;  %v172_v27 = vld [vmem:[#allocation6 + $0x78] sm:$0xff]  ;;  %v773_v28 = vpack.c.bf16 %v168_v21, %v165_v20  ;;  %v179_v30 = vld [vmem:[#allocation6 + $0xb0] sm:$0xff]  ;;  %p935_p13 = por %p934_p12, %p933_p11 }
  0x3e   :  { %662 = vmatmul.mubr.msk.f32.vlgmr.msra.gmra.mrb[0].mxu0 %vm82_vm1, %v72_v5  ;;  %742 = vmatprep.subr.bf16.mxu1 %v741_v18  ;;  %v745_v25 = vpack.c.bf16 %v173_v24, %v170_v23  ;;  %v169_v26 = vld [vmem:[#allocation6 + $0x60] sm:$0xff]  ;;  %v176_v29 = vld [vmem:[#allocation6 + $0x98] sm:$0xff]  ;;  %v171_v31 = vld [vmem:[#allocation6 + $0x70] sm:$0xff] }
  0x3f   :  { %771 = vmatpush3.bf16.msra.mxu0 %v770_v14  ;;  %696 = vmatprep.mubr.msk.f32.mxu0 %vm964_vm0, %v965_v1  ;;  %v174_v32 = vld [vmem:[#allocation6 + $0x88] sm:$0xff]  ;;  %v747_v33 = vpack.c.bf16 %v172_v27, %v169_v26  ;;  %v749_v34 = vpack.c.bf16 %v179_v30, %v176_v29  ;;  %v175_v35 = vld [vmem:[#allocation6 + $0x90] sm:$0xff]  ;;  %v185_v39 = vld [vmem:[#allocation6 + $0xe0] sm:$0xff]  ;;  %p936_p0 = pnand %p935_p13, %p929_p10 }
  0x40   :  { %772 = vmatprep.subr.bf16.mxu0 %v963_v0  ;;  %v178_v36 = vld [vmem:[#allocation6 + $0xa8] sm:$0xff]  ;;  %v776_v37 = vpack.c.bf16 %v174_v32, %v171_v31  ;;  %v177_v40 = vld [vmem:[#allocation6 + $0xa0] sm:$0xff]  ;;  %v180_v41 = vld [vmem:[#allocation6 + $0xb8] sm:$0xff] }
  0x41   :  { %744 = vmatpush1.bf16.msra.mxu1 %v743_v22  ;;  %v182_v38 = vld [vmem:[#allocation6 + $0xc8] sm:$0xff]  ;;  %v751_v42 = vpack.c.bf16 %v178_v36, %v175_v35  ;;  %v181_v44 = vld [vmem:[#allocation6 + $0xc0] sm:$0xff]  ;;  %v184_v45 = vld [vmem:[#allocation6 + $0xd8] sm:$0xff]  ;;  %v779_v46 = vpack.c.bf16 %v180_v41, %v177_v40 }
  0x42   :  { %746 = vmatprep.subr.bf16.mxu1 %v745_v25  ;;  %v753_v43 = vpack.c.bf16 %v185_v39, %v182_v38  ;;  %v188_v47 = vld [vmem:[#allocation6 + $0xf8] sm:$0xff]  ;;  %v191_v48 = vld [vmem:[#allocation6 + $0x110] sm:$0xff]  ;;  %v186_v50 = vld [vmem:[#allocation6 + $0xe8] sm:$0xff]  ;;  %v755_v51 = vpack.c.bf16 %v184_v45, %v181_v44 }
  0x43   :  { %774 = vmatpush3.bf16.msra.mxu0 %v773_v28  ;;  %v183_v49 = vld [vmem:[#allocation6 + $0xd0] sm:$0xff]  ;;  %v757_v52 = vpack.c.bf16 %v191_v48, %v188_v47  ;;  %v190_v54 = vld [vmem:[#allocation6 + $0x108] sm:$0xff]  ;;  %v197_v57 = vld [vmem:[#allocation6 + $0x140] sm:$0xff] }
  0x44   :  { %775 = vmatprep.subr.bf16.mxu0 %v963_v0  ;;  %v187_v53 = vld [vmem:[#allocation6 + $0xf0] sm:$0xff]  ;;  %v782_v55 = vpack.c.bf16 %v186_v50, %v183_v49  ;;  %v194_v56 = vld [vmem:[#allocation6 + $0x128] sm:$0xff]  ;;  %v189_v58 = vld [vmem:[#allocation6 + $0x100] sm:$0xff] }
  0x45   :  { %748 = vmatpush1.bf16.msra.mxu1 %v747_v33  ;;  %v192_v59 = vld [vmem:[#allocation6 + $0x118] sm:$0xff]  ;;  %v759_v60 = vpack.c.bf16 %v190_v54, %v187_v53  ;;  %v761_v61 = vpack.c.bf16 %v197_v57, %v194_v56  ;;  %v193_v62 = vld [vmem:[#allocation6 + $0x120] sm:$0xff]  ;;  %v195_v3 = vld [vmem:[#allocation6 + $0x130] sm:$0xff] }
  0x46   :  { %750 = vmatprep.subr.bf16.mxu1 %v749_v34  ;;  %v196_v63 = vld [vmem:[#allocation6 + $0x138] sm:$0xff]  ;;  %v785_v2 = vpack.c.bf16 %v192_v59, %v189_v58  ;;  %v198_v4 = vld [vmem:[#allocation6 + $0x148] sm:$0xff]  ;;  %v203_v8 = vld [vmem:[#allocation6 + $0x170] sm:$0xff] }
  0x47   :  { %777 = vmatpush3.bf16.msra.mxu0 %v776_v37  ;;  %v763_v5 = vpack.c.bf16 %v196_v63, %v193_v62  ;;  %v788_v6 = vpack.c.bf16 %v198_v4, %v195_v3  ;;  %v200_v7 = vld [vmem:[#allocation6 + $0x158] sm:$0xff]  ;;  %v199_v10 = vld [vmem:[#allocation6 + $0x150] sm:$0xff]  ;;  %v202_v11 = vld [vmem:[#allocation6 + $0x168] sm:$0xff] }
  0x48   :  { %778 = vmatprep.subr.bf16.mxu0 %v963_v0  ;;  %v765_v9 = vpack.c.bf16 %v203_v8, %v200_v7  ;;  %v201_v12 = vld [vmem:[#allocation6 + $0x160] sm:$0xff]  ;;  %v767_v13 = vpack.c.bf16 %v202_v11, %v199_v10  ;;  %v204_v14 = vld [vmem:[#allocation6 + $0x178] sm:$0xff]  ;;  %v383_v17 = vld [vmem:[#allocation8 + $0x88] sm:$0xff] }
  0x49   :  { %752 = vmatpush1.bf16.msra.mxu1 %v751_v42  ;;  %v791_v15 = vpack.c.bf16 %v204_v14, %v201_v12  ;;  %v382_v16 = vld [vmem:[#allocation8 + $0x80] sm:$0xff]  ;;  %v582_v19 = vld [vmem:[%s1103_s3] ss:$0 sm:$0xff]  ;;  %v399_v21 = vld [vmem:[#allocation8 + $0x108] sm:$0xff] }
  0x4a   :  { %754 = vmatprep.subr.bf16.mxu1 %v753_v43  ;;  %v793_v18 = vpack.c.bf16 %v383_v17, %v382_v16  ;;  %v398_v20 = vld [vmem:[#allocation8 + $0x100] sm:$0xff]  ;;  %v367_v23 = vld [vmem:[#allocation8 + $0x8] sm:$0xff]  ;;  %v384_v25 = vld [vmem:[#allocation8 + $0x90] sm:$0xff] }
  0x4b   :  { %780 = vmatpush3.bf16.msra.mxu0 %v779_v46  ;;  %v366_v22 = vld [vmem:[#allocation8] sm:$0xff]  ;;  %v385_v26 = vld [vmem:[#allocation8 + $0x98] sm:$0xff]  ;;  %v826_v29 = vpack.c.bf16 %v399_v21, %v398_v20  ;;  %v400_v31 = vld [vmem:[#allocation8 + $0x110] sm:$0xff] }
  0x4c   :  { %781 = vmatprep.subr.bf16.mxu0 %v963_v0  ;;  %v795_v30 = vpack.c.bf16 %v367_v23, %v366_v22  ;;  %v401_v33 = vld [vmem:[#allocation8 + $0x118] sm:$0xff]  ;;  %v797_v34 = vpack.c.bf16 %v385_v26, %v384_v25  ;;  %v368_v35 = vld [vmem:[#allocation8 + $0x10] sm:$0xff]  ;;  %v386_v37 = vld [vmem:[#allocation8 + $0xa0] sm:$0xff] }
  0x4d   :  { %756 = vmatpush1.bf16.msra.mxu1 %v755_v51  ;;  %v369_v36 = vld [vmem:[#allocation8 + $0x18] sm:$0xff]  ;;  %v387_v38 = vld [vmem:[#allocation8 + $0xa8] sm:$0xff]  ;;  %v829_v39 = vpack.c.bf16 %v401_v33, %v400_v31  ;;  %v402_v41 = vld [vmem:[#allocation8 + $0x120] sm:$0xff] }
  0x4e   :  { %758 = vmatprep.subr.bf16.mxu1 %v757_v52  ;;  %v799_v40 = vpack.c.bf16 %v369_v36, %v368_v35  ;;  %v403_v42 = vld [vmem:[#allocation8 + $0x128] sm:$0xff]  ;;  %v801_v43 = vpack.c.bf16 %v387_v38, %v386_v37  ;;  %v370_v44 = vld [vmem:[#allocation8 + $0x20] sm:$0xff]  ;;  %v388_v46 = vld [vmem:[#allocation8 + $0xb0] sm:$0xff] }
  0x4f   :  { %783 = vmatpush3.bf16.msra.mxu0 %v782_v55  ;;  %v371_v45 = vld [vmem:[#allocation8 + $0x28] sm:$0xff]  ;;  %v389_v47 = vld [vmem:[#allocation8 + $0xb8] sm:$0xff]  ;;  %v832_v48 = vpack.c.bf16 %v403_v42, %v402_v41  ;;  %v404_v50 = vld [vmem:[#allocation8 + $0x130] sm:$0xff] }
  0x50   :  { %784 = vmatprep.subr.bf16.mxu0 %v963_v0  ;;  %v803_v49 = vpack.c.bf16 %v371_v45, %v370_v44  ;;  %v405_v51 = vld [vmem:[#allocation8 + $0x138] sm:$0xff]  ;;  %v805_v52 = vpack.c.bf16 %v389_v47, %v388_v46  ;;  %v372_v53 = vld [vmem:[#allocation8 + $0x30] sm:$0xff]  ;;  %v390_v55 = vld [vmem:[#allocation8 + $0xc0] sm:$0xff] }
  0x51   :  { %760 = vmatpush1.bf16.msra.mxu1 %v759_v60  ;;  %v373_v54 = vld [vmem:[#allocation8 + $0x38] sm:$0xff]  ;;  %v391_v56 = vld [vmem:[#allocation8 + $0xc8] sm:$0xff]  ;;  %v835_v57 = vpack.c.bf16 %v405_v51, %v404_v50  ;;  %v406_v59 = vld [vmem:[#allocation8 + $0x140] sm:$0xff] }
  0x52   :  { %762 = vmatprep.subr.bf16.mxu1 %v761_v61  ;;  %v807_v58 = vpack.c.bf16 %v373_v54, %v372_v53  ;;  %v809_v60 = vpack.c.bf16 %v391_v56, %v390_v55  ;;  %v374_v61 = vld [vmem:[#allocation8 + $0x40] sm:$0xff]  ;;  %v375_v62 = vld [vmem:[#allocation8 + $0x48] sm:$0xff]  ;;  %v392_v63 = vld [vmem:[#allocation8 + $0xd0] sm:$0xff]  ;;  %v563_v56 = vstv %s1100_s0 }
  0x53   :  { %786 = vmatpush3.bf16.msra.mxu0 %v785_v2  ;;  %v393_v2 = vld [vmem:[#allocation8 + $0xd8] sm:$0xff]  ;;  %v811_v4 = vpack.c.bf16 %v375_v62, %v374_v61  ;;  %v376_v8 = vld [vmem:[#allocation8 + $0x50] sm:$0xff]  ;;  %v394_v10 = vld [vmem:[#allocation8 + $0xe0] sm:$0xff] }
  0x54   :  { %787 = vmatprep.subr.bf16.mxu0 %v963_v0  ;;  %v813_v7 = vpack.c.bf16 %v393_v2, %v392_v63  ;;  %v395_v11 = vld [vmem:[#allocation8 + $0xe8] sm:$0xff]  ;;  %v410_v14 = vld [vmem:[#allocation8 + $0x160] sm:$0xff]  ;;  %v412_v21 = vld [vmem:[#allocation8 + $0x170] sm:$0xff] }
  0x55   :  { %764 = vmatpush1.bf16.msra.mxu1 %v763_v5  ;;  %v408_v5 = vld [vmem:[#allocation8 + $0x150] sm:$0xff]  ;;  %v817_v16 = vpack.c.bf16 %v395_v11, %v394_v10  ;;  %v413_v22 = vld [vmem:[#allocation8 + $0x178] sm:$0xff] }
  0x56   :  { %766 = vmatprep.subr.bf16.mxu1 %v765_v9  ;;  %v377_v9 = vld [vmem:[#allocation8 + $0x58] sm:$0xff]  ;;  %v847_v23 = vpack.c.bf16 %v413_v22, %v412_v21  ;;  %v205_v33 = vld [vmem:[%s1105_s5] sm:$0x7] }
  0x57   :  { %789 = vmatpush3.bf16.msra.mxu0 %v788_v6  ;;  %v409_v6 = vld [vmem:[#allocation8 + $0x158] sm:$0xff]  ;;  %v584_v51 = vld [vmem:[%s1107_s7] ss:$0 sm:$0xff] }
  0x58   :  { %790 = vmatprep.subr.bf16.mxu0 %v963_v0  ;;  %v841_v12 = vpack.c.bf16 %v409_v6, %v408_v5  ;;  %v397_v25 = vld [vmem:[#allocation8 + $0xf8] sm:$0xff] }
  0x59   :  { %768 = vmatpush1.bf16.msra.mxu1 %v767_v13  ;;  %v815_v13 = vpack.c.bf16 %v377_v9, %v376_v8 }
  0x5a   :  { %794 = vmatprep.subr.bf16.mxu1 %v793_v18  ;;  %v378_v18 = vld [vmem:[#allocation8 + $0x60] sm:$0xff] }
  0x5b   :  { %792 = vmatpush3.bf16.msra.mxu0 %v791_v15  ;;  %v411_v15 = vld [vmem:[#allocation8 + $0x168] sm:$0xff] }
  0x5c   :  { %825 = vmatprep.subr.bf16.mxu0 %v963_v0  ;;  %v844_v17 = vpack.c.bf16 %v411_v15, %v410_v14 }
 0x111   :  { %v152_v24 = vpop.f32.mrb[0].mxu0 }
 0x112   :  { %v153_v27 = vadd.f32 %v582_v19, %v152_v24  ;;  %v663_v28 = vpop.f32.mrb[1].mxu0  ;;  %v379_v19 = vld [vmem:[#allocation8 + $0x68] sm:$0xff]  ;;  %v396_v24 = vld [vmem:[#allocation8 + $0xf0] sm:$0xff] }
 0x113   :  { %v819_v20 = vpack.c.bf16 %v379_v19, %v378_v18  ;;  %v821_v26 = vpack.c.bf16 %v397_v25, %v396_v24  ;;  %v381_v28 = vld [vmem:[#allocation8 + $0x78] sm:$0xff] }
 0x114   :  { %v156_v32 = vmax.f32 %v153_v27, 0.0  ;;  %v380_v27 = vld [vmem:[#allocation8 + $0x70] sm:$0xff] }
 0x116   :  { %287 = vmatmul.mubr.f32.vlgmr.msra.gmra.mrb[0].mxu1 %v156_v32  ;;  %697 = vmatmul.mubr.f32.vlgmr.msra.gmra.mrb[2].mxu0 %v156_v32 }
 0x117   :  { %827 = vmatpush3.bf16.msra.mxu0 %v826_v29  ;;  %796 = vmatpush3.bf16.msra.mxu1 %v795_v30  ;;  %v823_v29 = vpack.c.bf16 %v381_v28, %v380_v27  ;;  %v207_v30 = vlaneseq }
 0x118   :  { %828 = vmatprep.subr.bf16.mxu0 %v963_v0  ;;  %798 = vmatprep.subr.bf16.mxu1 %v797_v34 }
 0x119   :  { %731 = vmatprep.mubr.msk.f32.mxu0 %vm964_vm0, %v965_v1  ;;  %v407_v1 = vld [vmem:[#allocation8 + $0x148] sm:$0xff]  ;;  %v208_v31 = vshrl.u32 %v207_v30, 7 }
 0x11a   :  { %v838_v3 = vpack.c.bf16 %v407_v1, %v406_v59 }
 0x11b   :  { %830 = vmatpush3.bf16.msra.mxu0 %v829_v39  ;;  %800 = vmatpush3.bf16.msra.mxu1 %v799_v40  ;;  %v209_v32 = vsub.s32 0, %v208_v31  ;;  %v213_v34 = vsub.s32 1, %v208_v31 }
 0x11c   :  { %831 = vmatprep.subr.bf16.mxu0 %v963_v0  ;;  %802 = vmatprep.subr.bf16.mxu1 %v801_v43 }
 0x11d   :  { %v210_v35 = vrot.slane %v205_v33, %v209_v32  ;;  %v214_v37 = vrot.slane %v205_v33, %v213_v34 }
 0x11f   :  { %833 = vmatpush3.bf16.msra.mxu0 %v832_v48  ;;  %804 = vmatpush3.bf16.msra.mxu1 %v803_v49 }
 0x120   :  { %834 = vmatprep.subr.bf16.mxu0 %v963_v0  ;;  %806 = vmatprep.subr.bf16.mxu1 %v805_v52 }
 0x123   :  { %836 = vmatpush3.bf16.msra.mxu0 %v835_v57  ;;  %808 = vmatpush3.bf16.msra.mxu1 %v807_v58 }
 0x124   :  { %837 = vmatprep.subr.bf16.mxu0 %v963_v0  ;;  %810 = vmatprep.subr.bf16.mxu1 %v809_v60 }
 0x127   :  { %839 = vmatpush3.bf16.msra.mxu0 %v838_v3  ;;  %812 = vmatpush3.bf16.msra.mxu1 %v811_v4 }
 0x128   :  { %840 = vmatprep.subr.bf16.mxu0 %v963_v0  ;;  %814 = vmatprep.subr.bf16.mxu1 %v813_v7 }
 0x12b   :  { %842 = vmatpush3.bf16.msra.mxu0 %v841_v12  ;;  %816 = vmatpush3.bf16.msra.mxu1 %v815_v13 }
 0x12c   :  { %843 = vmatprep.subr.bf16.mxu0 %v963_v0  ;;  %818 = vmatprep.subr.bf16.mxu1 %v817_v16 }
 0x12f   :  { %845 = vmatpush3.bf16.msra.mxu0 %v844_v17  ;;  %820 = vmatpush3.bf16.msra.mxu1 %v819_v20 }
 0x130   :  { %846 = vmatprep.subr.bf16.mxu0 %v963_v0  ;;  %822 = vmatprep.subr.bf16.mxu1 %v821_v26  ;;  %v217_v0 = vsub.s32 2, %v208_v31 }
 0x132   :  { %v218_v36 = vrot.slane %v205_v33, %v217_v0 }
 0x133   :  { %848 = vmatpush3.bf16.msra.mxu0 %v847_v23  ;;  %824 = vmatpush3.bf16.msra.mxu1 %v823_v29 }
 0x1e9   :  { %v288_v38 = vpop.f32.mrb[0].mxu1  ;;  %v359_v39 = vpop.f32.mrb[2].mxu0 }
 0x1ea   :  { %v289_v40 = vadd.f32 %v288_v38, %v210_v35  ;;  %v360_v41 = vadd.f32 %v359_v39, %v218_v36  ;;  %v290_v42 = vpop.f32.mrb[1].mxu1  ;;  %v698_v43 = vpop.f32.mrb[3].mxu0 }
 0x1eb   :  { %v291_v44 = vadd.f32 %v290_v42, %v214_v37 }
 0x1ec   :  { %v365_v45 = vmax.f32 %v360_v41, 0.0  ;;  %v363_v47 = vmax.f32 %v289_v40, 0.0 }
 0x1ed   :  { %v364_v46 = vmax.f32 %v291_v44, 0.0 }
 0x1ee   :  { %732 = vmatmul.mubr.f32.vlgmr.msra.gmra.mrb[4].mxu0 %v365_v45 }
 0x1ef   :  { %486 = vmatprep.mubr.f32.mxu1 %v364_v46 }
 0x1f0   :  { %487 = vmatmul.mubr.f32.vlgmr.msra.gmra.mrb[2].mxu1 %v363_v47 }
 0x2c1   :  { %v558_v48 = vpop.f32.mrb[4].mxu0 }
 0x2c2   :  { %v733_v49 = vpop.f32.mrb[5].mxu0 }
 0x2c3   :  { %v637_v50 = vpop.f32.mrb[2].mxu1 }
 0x2c4   :  { %v638_v52 = vpop.f32.mrb[3].mxu1 }
 0x2c5   :  { %v639_v53 = vadd.f32 %v638_v52, %v637_v50 }
 0x2c7   :  { %v489_v54 = vadd.f32 %v639_v53, %v584_v51 }
 0x2c9   :  { %v559_v55 = vadd.f32 %v558_v48, %v489_v54 }
 0x2cb   :  { %860 = vtanh.f32 %v559_v55 }
 0x2d5   :  { %v861_v57 = vpop.eup %860 }
 0x2d6   :  { %v564_v58 = vmul.f32 %v861_v57, %v563_v56 }
 0x2d8   :  { %565 = vst [vmem:[#allocation9] sm:$0x3] %v564_v58 }
 0x2d9   :  { %939 = shalt.err (!%p936_p0)
}
 0x2da   :  { %s940_s30 = scalar_lea.hbm %s1108_s8, 32 }
 0x2db   :  { %p941_p1 = scmp.ne.s32.totalorder %s1108_s8, %s940_s30  ;;  %p944_p2 = scmp.lt.u32.totalorder %s940_s30, %s1108_s8 }
 0x2dd   :  { %p946_p3 = pnand %p944_p2, %p941_p1 }
 0x2df   :  { %949 = shalt.err (!%p946_p3)
}
 0x2e0   :  { %575 = dma.vmem_to_hbm [thread:$0]  %s573_s29, 32, %s1108_s8, [#allocation5]  }
 0x2e1   :  { %954 = dma.done.wait [#allocation5], 32  }
 0x2e2   :  { %955 = vsyncadd [#allocation5], 4294967264 }
 0x2e3   :  { %579 = vsyncpa [#allocation4], 1 }
 0x2e4   :  { %580 = vsyncpa [#allocation7], 1 }
 0x2e5   :  { %581 = vsyncpa [#allocation5], 1 }

</bundles_post_ra>
